<compile_context>
chip_gen: v7x
topology: tpu7x:2x2x1
jax: 0.10.0
libtpu: 0.0.40
codegen_flags: <defaults>
</compile_context>

<pallas_src>
import functools

import jax
import jax.numpy as jnp
from jax.experimental import pallas as pl
from jax.experimental.pallas import tpu as pltpu


def _round_up(v, m):
    return ((v + m - 1) // m) * m


def _sae_kernel(norm_p, x_ref, wet_ref, be_ref, wdt_ref, bd_ref,
                y_ref, norm_ref, f_ref, y_acc, lp_acc):
    """One (batch-tile i, hidden-tile k) grid step.

    x_ref   : [TB, D]   resident across the hidden axis
    wet_ref : [D,  TH]  encoder weight (pre-transposed), streamed over H
    be_ref  : [1,  TH]
    wdt_ref : [TH, D]   decoder weight (pre-transposed), streamed over H
    bd_ref  : [1,  D]
    y_ref   : [TB, D]   written once (last hidden tile)
    norm_ref: [TB, 1]   written once (last hidden tile), f32
    f_ref   : [TB, TH]  written every step
    y_acc   : [TB, D]   f32 accumulator (VMEM scratch)
    lp_acc  : [TB, 1]   f32 accumulator (VMEM scratch)
    """
    k = pl.program_id(1)
    nk = pl.num_programs(1)

    @pl.when(k == 0)
    def _init():
        y_acc[...] = jnp.zeros_like(y_acc)
        lp_acc[...] = jnp.zeros_like(lp_acc)

    # encoder tile:  f = relu(x @ W_e^T + b_e)   -> [TB, TH]
    f = jnp.dot(x_ref[...], wet_ref[...], preferred_element_type=jnp.float32)
    f = jnp.maximum(f + be_ref[...], 0.0)
    f_ref[...] = f.astype(f_ref.dtype)

    # Lp partial sum over this hidden tile (f >= 0 post-ReLU: no abs needed).
    if norm_p == 1.0:
        part = jnp.sum(f, axis=1, keepdims=True)
    elif norm_p == 2.0:
        part = jnp.sum(f * f, axis=1, keepdims=True)
    else:
        # guard pow(0, p) on the (frequent) exact zeros produced by ReLU
        pos = f > 0.0
        fp = jnp.where(pos, f, 1.0) ** norm_p
        part = jnp.sum(jnp.where(pos, fp, 0.0), axis=1, keepdims=True)
    lp_acc[...] += part

    # decoder partial:  y += f @ W_d^T   -> [TB, D]
    y_acc[...] += jnp.dot(f, wdt_ref[...], preferred_element_type=jnp.float32)

    @pl.when(k == nk - 1)
    def _finalize():
        # decoder bias added once per output tile, not per hidden tile
        y_ref[...] = (y_acc[...] + bd_ref[...]).astype(y_ref.dtype)
        s = lp_acc[...]
        if norm_p == 1.0:
            lp = s
        elif norm_p == 2.0:
            lp = jnp.sqrt(s)
        else:
            lp = s ** (1.0 / norm_p)
        norm_ref[...] = lp


def sparse_autoencoder_forward(x, w_enc, b_enc, w_dec, b_dec, norm_p=1.0,
                               with_activations=False, tb=256, th=512):
    """x: [B, D_in]. Returns (decoded, lp_norm[, f]) like the PyTorch module."""
    B, D_in = x.shape
    H = w_enc.shape[0]
    dt = x.dtype

    # Tile sizes: lane/sublane aligned, capped so small problems stay 1 tile.
    TB = min(tb, _round_up(B, 8))
    TH = min(th, _round_up(H, 128))
    B_pad = _round_up(B, TB)
    H_pad = _round_up(H, TH)
    D_pad = _round_up(D_in, 128)

    # Zero-pad + pre-transpose weights once at the JAX level (no in-kernel .T).
    xp = jnp.zeros((B_pad, D_pad), dt).at[:B, :D_in].set(x)
    wet = jnp.zeros((D_pad, H_pad), w_enc.dtype).at[:D_in, :H].set(w_enc.T)
    wdt = jnp.zeros((H_pad, D_pad), w_dec.dtype).at[:H, :D_in].set(w_dec.T)
    be = jnp.zeros((1, H_pad), b_enc.dtype).at[0, :H].set(b_enc)
    bd = jnp.zeros((1, D_pad), b_dec.dtype).at[0, :D_in].set(b_dec)

    grid = (B_pad // TB, H_pad // TH)
    kernel = functools.partial(_sae_kernel, float(norm_p))

    # Rough per-step VMEM footprint (double-buffered streamed operands); raise
    # the scoped limit if needed, capped at 64 MiB (safe on v5e/v6e/v7x).
    isz = x.dtype.itemsize
    est = (2 * TB * D_pad * isz                       # x
           + 2 * D_pad * TH * w_enc.dtype.itemsize    # W_e^T tile
           + 2 * TH * D_pad * w_dec.dtype.itemsize    # W_d^T tile
           + 2 * TB * TH * isz                        # f output tile
           + 2 * TB * D_pad * isz                     # y output tile
           + TB * D_pad * 4 + TB * 128 * 4)           # f32 accumulators
    vmem_limit = int(min(max(2 * est, 32 * 1024 * 1024), 64 * 1024 * 1024))

    y, lp, f = pl.pallas_call(
        kernel,
        out_shape=(
            jax.ShapeDtypeStruct((B_pad, D_pad), dt),
            jax.ShapeDtypeStruct((B_pad, 1), jnp.float32),
            jax.ShapeDtypeStruct((B_pad, H_pad), dt),
        ),
        grid=grid,
        in_specs=[
            pl.BlockSpec((TB, D_pad), lambda i, k: (i, 0)),   # x (resident)
            pl.BlockSpec((D_pad, TH), lambda i, k: (0, k)),   # W_e^T stream
            pl.BlockSpec((1, TH), lambda i, k: (0, k)),       # b_e stream
            pl.BlockSpec((TH, D_pad), lambda i, k: (k, 0)),   # W_d^T stream
            pl.BlockSpec((1, D_pad), lambda i, k: (0, 0)),    # b_d
        ],
        out_specs=(
            pl.BlockSpec((TB, D_pad), lambda i, k: (i, 0)),   # y accumulator
            pl.BlockSpec((TB, 1), lambda i, k: (i, 0)),       # lp norm
            pl.BlockSpec((TB, TH), lambda i, k: (i, k)),      # f activations
        ),
        scratch_shapes=[
            pltpu.VMEM((TB, D_pad), jnp.float32),             # y accumulator
            pltpu.VMEM((TB, 1), jnp.float32),                 # lp accumulator
        ],
        compiler_params=pltpu.CompilerParams(
            dimension_semantics=("parallel", "arbitrary"),
            vmem_limit_bytes=vmem_limit,
        ),
    )(xp, wet, be, wdt, bd)

    decoded = y[:B, :D_in]
    lp_norm = lp[:B, 0].astype(dt)
    if with_activations:
        return decoded, lp_norm, f[:B, :H]
    return decoded, lp_norm


def _reference(x, w_enc, b_enc, w_dec, b_dec, norm_p=1.0):
    f = jnp.maximum(x @ w_enc.T + b_enc, 0.0)
    lp = jnp.sum(jnp.abs(f) ** norm_p, axis=1) ** (1.0 / norm_p)
    y = f @ w_dec.T + b_dec
    return y, lp, f


if __name__ == "__main__":
    B, D_in, H = 8, 64, 32

    key = jax.random.PRNGKey(0)
    k_x, k_we, k_be, k_wd, k_bd = jax.random.split(key, 5)

    x = jax.random.normal(k_x, (B, D_in), dtype=jnp.float32)
    # synthetic parameters; shapes follow torch.nn.Linear conventions
    w_enc = jax.random.normal(k_we, (H, D_in), dtype=jnp.float32) * 0.1
    b_enc = jax.random.normal(k_be, (H,), dtype=jnp.float32) * 0.1
    w_dec = jax.random.normal(k_wd, (D_in, H), dtype=jnp.float32) * 0.1
    b_dec = jax.random.normal(k_bd, (D_in,), dtype=jnp.float32) * 0.1

    # norm_p = 1.0 (module default), with activations
    y1, lp1, f1 = sparse_autoencoder_forward(
        x, w_enc, b_enc, w_dec, b_dec, norm_p=1.0, with_activations=True)
    jax.block_until_ready((y1, lp1, f1))
    y1r, lp1r, f1r = _reference(x, w_enc, b_enc, w_dec, b_dec, norm_p=1.0)
    assert jnp.allclose(y1, y1r, atol=1e-4, rtol=1e-4)
    assert jnp.allclose(lp1, lp1r, atol=1e-4, rtol=1e-4)
    assert jnp.allclose(f1, f1r, atol=1e-4, rtol=1e-4)

    # norm_p = 2.0 branch, without activations
    y2, lp2 = sparse_autoencoder_forward(
        x, w_enc, b_enc, w_dec, b_dec, norm_p=2.0, with_activations=False)
    jax.block_until_ready((y2, lp2))
    y2r, lp2r, _ = _reference(x, w_enc, b_enc, w_dec, b_dec, norm_p=2.0)
    assert jnp.allclose(y2, y2r, atol=1e-4, rtol=1e-4)
    assert jnp.allclose(lp2, lp2r, atol=1e-4, rtol=1e-4)

    print("KERNEL_OK")
</pallas_src>

<mosaic_0001>
module attributes {stable_mosaic.version = 11 : i64} {
  func.func @_sae_kernel(%arg0: i32, %arg1: i32, %arg2: memref<8x128xf32, #tpu.memory_space<vmem>>, %arg3: memref<128x128xf32, #tpu.memory_space<vmem>>, %arg4: memref<1x128xf32, #tpu.memory_space<vmem>>, %arg5: memref<128x128xf32, #tpu.memory_space<vmem>>, %arg6: memref<1x128xf32, #tpu.memory_space<vmem>>, %arg7: memref<8x128xf32, #tpu.memory_space<vmem>>, %arg8: memref<8x1xf32, #tpu.memory_space<vmem>>, %arg9: memref<8x128xf32, #tpu.memory_space<vmem>>, %arg10: memref<8x128xf32, #tpu.memory_space<vmem>>, %arg11: memref<8x1xf32, #tpu.memory_space<vmem>>) attributes {dimension_semantics = [#tpu.dimension_semantics<parallel>, #tpu.dimension_semantics<arbitrary>], iteration_bounds = array<i64: 1, 1>, scalar_prefetch = 0 : i64, scratch_operands = 2 : i64, tpu.core_type = #tpu.core_type<tc>, window_params = [{transform_indices = @transform_0, window_bounds = array<i64: 8, 128>}, {transform_indices = @transform_1, window_bounds = array<i64: 128, 128>}, {transform_indices = @transform_2, window_bounds = array<i64: 1, 128>}, {transform_indices = @transform_3, window_bounds = array<i64: 128, 128>}, {pipeline_mode = #tpu.pipeline_mode<synchronous>, transform_indices = @transform_4, window_bounds = array<i64: 1, 128>}, {transform_indices = @transform_5, window_bounds = array<i64: 8, 128>}, {transform_indices = @transform_6, window_bounds = array<i64: 8, 1>}, {transform_indices = @transform_7, window_bounds = array<i64: 8, 128>}]} {
    %c0_i32 = arith.constant 0 : i32
    %0 = arith.cmpi eq, %arg1, %c0_i32 : i32
    %1 = arith.extui %0 : i1 to i32
    %c0_i32_0 = arith.constant 0 : i32
    %2 = arith.cmpi ne, %1, %c0_i32_0 : i32
    scf.if %2 {
      %cst_23 = arith.constant 0.000000e+00 : f32
      %25 = vector.broadcast %cst_23 : f32 to vector<8x128xf32>
      %c0_24 = arith.constant 0 : index
      %c0_25 = arith.constant 0 : index
      %26 = vector.load %arg10[%c0_24, %c0_25] : memref<8x128xf32, #tpu.memory_space<vmem>>, vector<8x128xf32>
      tpu.vector_store %arg10[%c0_24, %c0_25], %25 {strides = array<i32>} : memref<8x128xf32, #tpu.memory_space<vmem>>, vector<8x128xf32>,
      %cst_26 = arith.constant 0.000000e+00 : f32
      %27 = vector.broadcast %cst_26 : f32 to vector<8x1xf32>
      %c0_27 = arith.constant 0 : index
      %c0_28 = arith.constant 0 : index
      %28 = vector.load %arg11[%c0_27, %c0_28] : memref<8x1xf32, #tpu.memory_space<vmem>>, vector<8x1xf32>
      tpu.vector_store %arg11[%c0_27, %c0_28], %27 {strides = array<i32>} : memref<8x1xf32, #tpu.memory_space<vmem>>, vector<8x1xf32>,
    } else {
    }
    %c0 = arith.constant 0 : index
    %c0_1 = arith.constant 0 : index
    %3 = vector.load %arg2[%c0, %c0_1] : memref<8x128xf32, #tpu.memory_space<vmem>>, vector<8x128xf32>
    %c0_2 = arith.constant 0 : index
    %c0_3 = arith.constant 0 : index
    %4 = vector.load %arg3[%c0_2, %c0_3] : memref<128x128xf32, #tpu.memory_space<vmem>>, vector<128x128xf32>
    %cst = arith.constant dense<0.000000e+00> : vector<8x128xf32>
    %5 = tpu.matmul %3, %4, %cst {dimension_numbers = #tpu.dot_dimension_numbers<[1], [0], [0], [1], [0, 0, 1, 1], [], []>} : vector<8x128xf32>, vector<128x128xf32>, vector<8x128xf32> -> vector<8x128xf32>
    %c0_4 = arith.constant 0 : index
    %c0_5 = arith.constant 0 : index
    %6 = vector.load %arg4[%c0_4, %c0_5] : memref<1x128xf32, #tpu.memory_space<vmem>>, vector<1x128xf32>
    %7 = vector.broadcast %6 : vector<1x128xf32> to vector<8x128xf32>
    %8 = arith.addf %5, %7 : vector<8x128xf32>
    %cst_6 = arith.constant 0.000000e+00 : f32
    %9 = vector.broadcast %cst_6 : f32 to vector<8x128xf32>
    %10 = arith.maximumf %8, %9 : vector<8x128xf32>
    %c0_7 = arith.constant 0 : index
    %c0_8 = arith.constant 0 : index
    %11 = vector.load %arg9[%c0_7, %c0_8] : memref<8x128xf32, #tpu.memory_space<vmem>>, vector<8x128xf32>
    tpu.vector_store %arg9[%c0_7, %c0_8], %10 {strides = array<i32>} : memref<8x128xf32, #tpu.memory_space<vmem>>, vector<8x128xf32>,
    %cst_9 = arith.constant dense<0.000000e+00> : vector<8xf32>
    %12 = vector.multi_reduction <add>, %10, %cst_9 [1] : vector<8x128xf32> to vector<8xf32>
    %13 = vector.shape_cast %12 : vector<8xf32> to vector<8x1xf32>
    %c0_10 = arith.constant 0 : index
    %c0_11 = arith.constant 0 : index
    %14 = vector.load %arg11[%c0_10, %c0_11] : memref<8x1xf32, #tpu.memory_space<vmem>>, vector<8x1xf32>
    %15 = arith.addf %14, %13 : vector<8x1xf32>
    %c0_12 = arith.constant 0 : index
    %c0_13 = arith.constant 0 : index
    %16 = vector.load %arg11[%c0_12, %c0_13] : memref<8x1xf32, #tpu.memory_space<vmem>>, vector<8x1xf32>
    tpu.vector_store %arg11[%c0_12, %c0_13], %15 {strides = array<i32>} : memref<8x1xf32, #tpu.memory_space<vmem>>, vector<8x1xf32>,
    %c0_14 = arith.constant 0 : index
    %c0_15 = arith.constant 0 : index
    %17 = vector.load %arg10[%c0_14, %c0_15] : memref<8x128xf32, #tpu.memory_space<vmem>>, vector<8x128xf32>
    %c0_16 = arith.constant 0 : index
    %c0_17 = arith.constant 0 : index
    %18 = vector.load %arg5[%c0_16, %c0_17] : memref<128x128xf32, #tpu.memory_space<vmem>>, vector<128x128xf32>
    %cst_18 = arith.constant dense<0.000000e+00> : vector<8x128xf32>
    %19 = tpu.matmul %10, %18, %cst_18 {dimension_numbers = #tpu.dot_dimension_numbers<[1], [0], [0], [1], [0, 0, 1, 1], [], []>} : vector<8x128xf32>, vector<128x128xf32>, vector<8x128xf32> -> vector<8x128xf32>
    %20 = arith.addf %17, %19 : vector<8x128xf32>
    %c0_19 = arith.constant 0 : index
    %c0_20 = arith.constant 0 : index
    %21 = vector.load %arg10[%c0_19, %c0_20] : memref<8x128xf32, #tpu.memory_space<vmem>>, vector<8x128xf32>
    tpu.vector_store %arg10[%c0_19, %c0_20], %20 {strides = array<i32>} : memref<8x128xf32, #tpu.memory_space<vmem>>, vector<8x128xf32>,
    %c0_i32_21 = arith.constant 0 : i32
    %22 = arith.cmpi eq, %arg1, %c0_i32_21 : i32
    %23 = arith.extui %22 : i1 to i32
    %c0_i32_22 = arith.constant 0 : i32
    %24 = arith.cmpi ne, %23, %c0_i32_22 : i32
    scf.if %24 {
      %c0_23 = arith.constant 0 : index
      %c0_24 = arith.constant 0 : index
      %25 = vector.load %arg10[%c0_23, %c0_24] : memref<8x128xf32, #tpu.memory_space<vmem>>, vector<8x128xf32>
      %c0_25 = arith.constant 0 : index
      %c0_26 = arith.constant 0 : index
      %26 = vector.load %arg6[%c0_25, %c0_26] : memref<1x128xf32, #tpu.memory_space<vmem>>, vector<1x128xf32>
      %27 = vector.broadcast %26 : vector<1x128xf32> to vector<8x128xf32>
      %28 = arith.addf %25, %27 : vector<8x128xf32>
      %c0_27 = arith.constant 0 : index
      %c0_28 = arith.constant 0 : index
      %29 = vector.load %arg7[%c0_27, %c0_28] : memref<8x128xf32, #tpu.memory_space<vmem>>, vector<8x128xf32>
      tpu.vector_store %arg7[%c0_27, %c0_28], %28 {strides = array<i32>} : memref<8x128xf32, #tpu.memory_space<vmem>>, vector<8x128xf32>,
      %c0_29 = arith.constant 0 : index
      %c0_30 = arith.constant 0 : index
      %30 = vector.load %arg11[%c0_29, %c0_30] : memref<8x1xf32, #tpu.memory_space<vmem>>, vector<8x1xf32>
      %c0_31 = arith.constant 0 : index
      %c0_32 = arith.constant 0 : index
      %31 = vector.load %arg8[%c0_31, %c0_32] : memref<8x1xf32, #tpu.memory_space<vmem>>, vector<8x1xf32>
      tpu.vector_store %arg8[%c0_31, %c0_32], %30 {strides = array<i32>} : memref<8x1xf32, #tpu.memory_space<vmem>>, vector<8x1xf32>,
    } else {
    }
    return
  }
  func.func @transform_0(%arg0: i32, %arg1: i32) -> (i32, i32) {
    %c0_i32 = arith.constant 0 : i32
    %c0_i32_0 = arith.constant 0 : i32
    return %arg0, %c0_i32 : i32, i32
  }
  func.func @transform_1(%arg0: i32, %arg1: i32) -> (i32, i32) {
    %c0_i32 = arith.constant 0 : i32
    %c0_i32_0 = arith.constant 0 : i32
    return %c0_i32, %arg1 : i32, i32
  }
  func.func @transform_2(%arg0: i32, %arg1: i32) -> (i32, i32) {
    %c0_i32 = arith.constant 0 : i32
    %c0_i32_0 = arith.constant 0 : i32
    return %c0_i32, %arg1 : i32, i32
  }
  func.func @transform_3(%arg0: i32, %arg1: i32) -> (i32, i32) {
    %c0_i32 = arith.constant 0 : i32
    %c0_i32_0 = arith.constant 0 : i32
    return %arg1, %c0_i32 : i32, i32
  }
  func.func @transform_4(%arg0: i32, %arg1: i32) -> (i32, i32) {
    %c0_i32 = arith.constant 0 : i32
    %c0_i32_0 = arith.constant 0 : i32
    %c0_i32_1 = arith.constant 0 : i32
    return %c0_i32, %c0_i32_0 : i32, i32
  }
  func.func @transform_5(%arg0: i32, %arg1: i32) -> (i32, i32) {
    %c0_i32 = arith.constant 0 : i32
    %c0_i32_0 = arith.constant 0 : i32
    return %arg0, %c0_i32 : i32, i32
  }
  func.func @transform_6(%arg0: i32, %arg1: i32) -> (i32, i32) {
    %c0_i32 = arith.constant 0 : i32
    %c0_i32_0 = arith.constant 0 : i32
    return %arg0, %c0_i32 : i32, i32
  }
  func.func @transform_7(%arg0: i32, %arg1: i32) -> (i32, i32) {
    %c0_i32 = arith.constant 0 : i32
    return %arg0, %arg1 : i32, i32
  }
}

</mosaic_0001>

<bundles_post_ra>
// kernel: tpu_custom_call.1
= control target key start
LH: loop header
LB: loop body
LE: loop exit
PB: predicated region body
PF: predicated region fallthrough
CT: control target
= control target key end

     0   :  { %13 = vsyncpa [#allocation5], 0  ;;  %s737_s0 = inlined_call_operand.hbm [shape: f32[8,128], index: 0, kind: input, shape index: {}]   ;;  %s738_s1 = inlined_call_operand.hbm [shape: f32[128,128], index: 1, kind: input, shape index: {}]   ;;  %s739_s2 = inlined_call_operand.vmem [shape: f32[1,128], index: 2, kind: input, shape index: {}]   ;;  %s740_s3 = inlined_call_operand.hbm [shape: f32[128,128], index: 3, kind: input, shape index: {}]   ;;  %s741_s4 = inlined_call_operand.vmem [shape: f32[1,128], index: 4, kind: input, shape index: {}]   ;;  %s742_s5 = inlined_call_operand.hbm [shape: f32[8,128], index: 5, kind: output, shape index: {0}]   ;;  %s743_s6 = inlined_call_operand.vmem [shape: f32[8,1], index: 6, kind: output, shape index: {1}]   ;;  %s744_s7 = inlined_call_operand.hbm [shape: f32[8,128], index: 7, kind: output, shape index: {2}]  }
   0x1   :  { %14 = vsyncpa [#allocation8], 0 }
   0x2   :  { %15 = vsyncpa [#allocation6], 0 }
   0x3   :  { %16 = vsyncpa [#allocation12], 0  ;;  %s593_s24 = smov [#allocation7]   ;;  %s475_s28 = scalar_lea.hbm %s738_s1, 2048 }
   0x4   :  { %s32_s25 = sshll.u32 %s593_s24, 4  ;;  %p476_p0 = scmp.ne.s32.totalorder %s738_s1, %s475_s28  ;;  %s33_s25 = int_to_ptr.vmem [resolvable:$true] %s32_s25 }
   0x5   :  { %p479_p1 = scmp.lt.u32.totalorder %s475_s28, %s738_s1 }
   0x7   :  { %p481_p2 = pnand %p479_p1, %p476_p0 }
   0x9   :  { %484 = shalt.err (!%p481_p2)
}
   0xa   :  { %s485_s10 = scalar_lea.vmem %s33_s25, 2048  ;;  %p490_p4 = scmp.lt.s32.totalorder %s33_s25, %s33_s25 }
   0xb   :  { %p486_p3 = scmp.ne.s32.totalorder %s33_s25, %s485_s10  ;;  %p491_p5 = scmp.lt.s32.totalorder %s485_s10, %s485_s10 }
   0xd   :  { %p492_p6 = por %p491_p5, %p490_p4 }
   0xf   :  { %p493_p7 = pnand %p492_p6, %p486_p3 }
  0x11   :  { %496 = shalt.err (!%p493_p7)
}
  0x12   :  { %s594_s11 = smov 128   ;;  %s595_s12 = smov 8  }
  0x13   :  { %38 = dma.hbm_to_vmem [thread:$0]  %s738_s1, 2048, %s33_s25, [#allocation8], %s594_s11, %s594_s11, %s595_s12  }
  0x14   :  { %s596_s15 = smov [#allocation4]   ;;  %s597_s17 = smov [#allocation9]  }
  0x15   :  { %s23_s16 = sshll.u32 %s596_s15, 4  ;;  %s46_s18 = sshll.u32 %s597_s17, 4  ;;  %s24_s16 = int_to_ptr.vmem [resolvable:$true] %s23_s16  ;;  %s47_s18 = int_to_ptr.vmem [resolvable:$true] %s46_s18 }
  0x16   :  { %s497_s21 = scalar_lea.hbm %s737_s0, 128 }
  0x17   :  { %p498_p8 = scmp.ne.s32.totalorder %s737_s0, %s497_s21  ;;  %p501_p9 = scmp.lt.u32.totalorder %s497_s21, %s737_s0 }
  0x19   :  { %p503_p10 = pnand %p501_p9, %p498_p8 }
  0x1b   :  { %506 = shalt.err (!%p503_p10)
}
  0x1c   :  { %s507_s1 = scalar_lea.vmem %s24_s16, 128  ;;  %p512_p12 = scmp.lt.s32.totalorder %s24_s16, %s24_s16 }
  0x1d   :  { %p508_p11 = scmp.ne.s32.totalorder %s24_s16, %s507_s1  ;;  %p513_p13 = scmp.lt.s32.totalorder %s507_s1, %s507_s1 }
  0x1f   :  { %p514_p0 = por %p513_p13, %p512_p12 }
  0x21   :  { %p515_p1 = pnand %p514_p0, %p508_p11 }
  0x23   :  { %518 = shalt.err (!%p515_p1)
}
  0x24   :  { %26 = dma.hbm_to_vmem [thread:$0]  %s737_s0, 128, %s24_s16, [#allocation5]  }
  0x25   :  { %s519_s30 = scalar_lea.hbm %s740_s3, 2048 }
  0x26   :  { %p520_p2 = scmp.ne.s32.totalorder %s740_s3, %s519_s30  ;;  %p523_p3 = scmp.lt.u32.totalorder %s519_s30, %s740_s3 }
  0x28   :  { %p525_p4 = pnand %p523_p3, %p520_p2 }
  0x2a   :  { %528 = shalt.err (!%p525_p4)
}
  0x2b   :  { %s529_s14 = scalar_lea.vmem %s47_s18, 2048  ;;  %p534_p6 = scmp.lt.s32.totalorder %s47_s18, %s47_s18 }
  0x2c   :  { %p530_p5 = scmp.ne.s32.totalorder %s47_s18, %s529_s14  ;;  %p535_p7 = scmp.lt.s32.totalorder %s529_s14, %s529_s14 }
  0x2e   :  { %p536_p8 = por %p535_p7, %p534_p6 }
  0x30   :  { %p537_p9 = pnand %p536_p8, %p530_p5 }
  0x32   :  { %540 = shalt.err (!%p537_p9)
}
  0x33   :  { %52 = dma.hbm_to_vmem [thread:$0]  %s740_s3, 2048, %s47_s18, [#allocation8], %s594_s11, %s594_s11, %s595_s12  }
  0x34   :  { %585 = dma.done.wait [#allocation5], 128  }
  0x35   :  { %586 = vsyncadd [#allocation5], 4294967168 }
  0x36   :  { %587 = dma.done.wait [#allocation8], 4096  }
  0x37   :  { %588 = vsyncadd [#allocation8], 4294963200  ;;  %vm69_vm0 = vcmask 7168   ;;  %v598_v0 = vmov 0.0|0.0   ;;  %v599_v1 = vmov 0.0   ;;  %vm600_vm1 = vmmov 0  }
  0x38   :  { %417 = vmatprep.subr.bf16.mxu0 %v598_v0  ;;  %70 = vst.msk [vmem:[#allocation3] sm:$0xff] %vm69_vm0, %v599_v1  ;;  %379 = vmatprep.mubr.msk.f32.mxu0 %vm600_vm1, %v599_v1  ;;  %v72_v2 = vld [vmem:[#allocation7] sm:$0xff]  ;;  %v73_v3 = vld [vmem:[#allocation7 + $0x8] sm:$0xff]  ;;  %v74_v4 = vld [vmem:[#allocation7 + $0x10] sm:$0xff]  ;;  %s601_s12 = smov [#allocation11]  }
  0x39   :  { %441 = vmatprep.subr.bf16.mxu1 %v598_v0  ;;  %414 = vmatprep.mubr.msk.f32.mxu1 %vm600_vm1, %v599_v1  ;;  %v418_v5 = vpack.c.bf16 %v73_v3, %v72_v2  ;;  %v75_v6 = vld [vmem:[#allocation7 + $0x18] sm:$0xff]  ;;  %v76_v8 = vld [vmem:[#allocation7 + $0x20] sm:$0xff]  ;;  %v77_v9 = vld [vmem:[#allocation7 + $0x28] sm:$0xff]  ;;  %s295_s16 = sshll.u32 %s601_s12, 4  ;;  %s296_s16 = int_to_ptr.vmem [resolvable:$true] %s295_s16 }
  0x3a   :  { %v421_v7 = vpack.c.bf16 %v75_v6, %v74_v4  ;;  %v174_v10 = vld [vmem:[#allocation9] sm:$0xff]  ;;  %v175_v11 = vld [vmem:[#allocation9 + $0x8] sm:$0xff]  ;;  %v176_v12 = vld [vmem:[#allocation9 + $0x10] sm:$0xff]  ;;  %v424_v14 = vpack.c.bf16 %v77_v9, %v76_v8  ;;  %s541_s17 = scalar_lea.vmem %s296_s16, 128  ;;  %p546_p11 = scmp.lt.s32.totalorder %s296_s16, %s296_s16 }
  0x3b   :  { %419 = vmatpush3.bf16.msra.mxu0 %v418_v5  ;;  %v177_v13 = vld [vmem:[#allocation9 + $0x18] sm:$0xff]  ;;  %v442_v15 = vpack.c.bf16 %v175_v11, %v174_v10  ;;  %v78_v16 = vld [vmem:[#allocation7 + $0x30] sm:$0xff]  ;;  %v178_v19 = vld [vmem:[#allocation9 + $0x20] sm:$0xff]  ;;  %p542_p10 = scmp.ne.s32.totalorder %s296_s16, %s541_s17  ;;  %p547_p12 = scmp.lt.s32.totalorder %s541_s17, %s541_s17 }
  0x3c   :  { %420 = vmatprep.subr.bf16.mxu0 %v598_v0  ;;  %v79_v17 = vld [vmem:[#allocation7 + $0x38] sm:$0xff]  ;;  %v445_v18 = vpack.c.bf16 %v177_v13, %v176_v12  ;;  %v179_v20 = vld [vmem:[#allocation9 + $0x28] sm:$0xff]  ;;  %v80_v22 = vld [vmem:[#allocation7 + $0x40] sm:$0xff] }
  0x3d   :  { %443 = vmatpush3.bf16.msra.mxu1 %v442_v15  ;;  %v427_v21 = vpack.c.bf16 %v79_v17, %v78_v16  ;;  %v81_v23 = vld [vmem:[#allocation7 + $0x48] sm:$0xff]  ;;  %v448_v24 = vpack.c.bf16 %v179_v20, %v178_v19  ;;  %v180_v25 = vld [vmem:[#allocation9 + $0x30] sm:$0xff]  ;;  %v181_v26 = vld [vmem:[#allocation9 + $0x38] sm:$0xff]  ;;  %p548_p13 = por %p547_p12, %p546_p11 }
  0x3e   :  { %444 = vmatprep.subr.bf16.mxu1 %v598_v0  ;;  %v430_v27 = vpack.c.bf16 %v81_v23, %v80_v22  ;;  %v82_v28 = vld [vmem:[#allocation7 + $0x50] sm:$0xff]  ;;  %v83_v29 = vld [vmem:[#allocation7 + $0x58] sm:$0xff]  ;;  %v451_v30 = vpack.c.bf16 %v181_v26, %v180_v25  ;;  %v182_v31 = vld [vmem:[#allocation9 + $0x40] sm:$0xff] }
  0x3f   :  { %422 = vmatpush3.bf16.msra.mxu0 %v421_v7  ;;  %v183_v32 = vld [vmem:[#allocation9 + $0x48] sm:$0xff]  ;;  %v433_v33 = vpack.c.bf16 %v83_v29, %v82_v28  ;;  %v84_v34 = vld [vmem:[#allocation7 + $0x60] sm:$0xff]  ;;  %v184_v37 = vld [vmem:[#allocation9 + $0x50] sm:$0xff]  ;;  %p549_p0 = pnand %p548_p13, %p542_p10 }
  0x40   :  { %423 = vmatprep.subr.bf16.mxu0 %v598_v0  ;;  %v85_v35 = vld [vmem:[#allocation7 + $0x68] sm:$0xff]  ;;  %v454_v36 = vpack.c.bf16 %v183_v32, %v182_v31  ;;  %v185_v38 = vld [vmem:[#allocation9 + $0x58] sm:$0xff]  ;;  %v86_v40 = vld [vmem:[#allocation7 + $0x70] sm:$0xff] }
  0x41   :  { %446 = vmatpush3.bf16.msra.mxu1 %v445_v18  ;;  %v436_v39 = vpack.c.bf16 %v85_v35, %v84_v34  ;;  %v87_v41 = vld [vmem:[#allocation7 + $0x78] sm:$0xff]  ;;  %v457_v42 = vpack.c.bf16 %v185_v38, %v184_v37  ;;  %v186_v43 = vld [vmem:[#allocation9 + $0x60] sm:$0xff]  ;;  %v187_v44 = vld [vmem:[#allocation9 + $0x68] sm:$0xff] }
  0x42   :  { %447 = vmatprep.subr.bf16.mxu1 %v598_v0  ;;  %v439_v45 = vpack.c.bf16 %v87_v41, %v86_v40  ;;  %v460_v46 = vpack.c.bf16 %v187_v44, %v186_v43  ;;  %v71_v47 = vld [vmem:[#allocation4] sm:$0xff]  ;;  %v188_v48 = vld [vmem:[#allocation9 + $0x70] sm:$0xff] }
  0x43   :  { %425 = vmatpush3.bf16.msra.mxu0 %v424_v14  ;;  %v189_v49 = vld [vmem:[#allocation9 + $0x78] sm:$0xff]  ;;  %v311_v51 = vld [vmem:[%s739_s2] ss:$0 sm:$0xff] }
  0x44   :  { %426 = vmatprep.subr.bf16.mxu0 %v598_v0  ;;  %v463_v50 = vpack.c.bf16 %v189_v49, %v188_v48 }
  0x45   :  { %449 = vmatpush3.bf16.msra.mxu1 %v448_v24 }
  0x46   :  { %450 = vmatprep.subr.bf16.mxu1 %v598_v0 }
  0x47   :  { %428 = vmatpush3.bf16.msra.mxu0 %v427_v21 }
  0x48   :  { %429 = vmatprep.subr.bf16.mxu0 %v598_v0 }
  0x49   :  { %452 = vmatpush3.bf16.msra.mxu1 %v451_v30 }
  0x4a   :  { %453 = vmatprep.subr.bf16.mxu1 %v598_v0 }
  0x4b   :  { %431 = vmatpush3.bf16.msra.mxu0 %v430_v27 }
  0x4c   :  { %432 = vmatprep.subr.bf16.mxu0 %v598_v0 }
  0x4d   :  { %455 = vmatpush3.bf16.msra.mxu1 %v454_v36 }
  0x4e   :  { %456 = vmatprep.subr.bf16.mxu1 %v598_v0 }
  0x4f   :  { %434 = vmatpush3.bf16.msra.mxu0 %v433_v33 }
  0x50   :  { %435 = vmatprep.subr.bf16.mxu0 %v598_v0 }
  0x51   :  { %458 = vmatpush3.bf16.msra.mxu1 %v457_v42 }
  0x52   :  { %459 = vmatprep.subr.bf16.mxu1 %v598_v0 }
  0x53   :  { %437 = vmatpush3.bf16.msra.mxu0 %v436_v39 }
  0x54   :  { %438 = vmatprep.subr.bf16.mxu0 %v598_v0 }
  0x55   :  { %461 = vmatpush3.bf16.msra.mxu1 %v460_v46 }
  0x56   :  { %462 = vmatprep.subr.bf16.mxu1 %v598_v0 }
  0x57   :  { %440 = vmatpush3.bf16.msra.mxu0 %v439_v45 }
  0x59   :  { %464 = vmatpush3.bf16.msra.mxu1 %v463_v50 }
  0x5a   :  { %380 = vmatmul.mubr.f32.vlgmr.msra.gmra.mrb[0].mxu0 %v71_v47 }
 0x12d   :  { %v161_v52 = vpop.f32.mrb[0].mxu0 }
 0x12e   :  { %v162_v53 = vadd.f32 %v311_v51, %v161_v52  ;;  %v381_v54 = vpop.f32.mrb[1].mxu0 }
 0x130   :  { %v165_v55 = vmax.f32 %v162_v53, 0.0 }
 0x132   :  { %166 = vst [vmem:[#allocation11] sm:$0xff] %v165_v55  ;;  %167 = vadd.xlane.f32.xlu0 %v165_v55  ;;  %415 = vmatmul.mubr.f32.vlgmr.msra.gmra.mrb[0].mxu1 %v165_v55 }
 0x133   :  { %552 = shalt.err (!%p549_p0)
}
 0x134   :  { %s553_s2 = scalar_lea.hbm %s744_s7, 128 }
 0x135   :  { %p554_p1 = scmp.ne.s32.totalorder %s744_s7, %s553_s2  ;;  %p557_p2 = scmp.lt.u32.totalorder %s553_s2, %s744_s7 }
 0x137   :  { %p559_p3 = pnand %p557_p2, %p554_p1 }
 0x139   :  { %562 = shalt.err (!%p559_p3)
}
 0x13a   :  { %298 = dma.vmem_to_hbm [thread:$0]  %s296_s16, 128, %s744_s7, [#allocation12]   ;;  %v169_v56 = vld [vmem:[#allocation3] sm:$0xff] }
 0x13b   :  { %v312_v60 = vld [vmem:[%s741_s4] ss:$0 sm:$0xff]  ;;  %s602_s29 = smov [#allocation10]  }
 0x13c   :  { %s283_s30 = sshll.u32 %s602_s29, 4  ;;  %s284_s30 = int_to_ptr.vmem [resolvable:$true] %s283_s30 }
 0x13d   :  { %s563_s7 = scalar_lea.vmem %s284_s30, 128  ;;  %p568_p5 = scmp.lt.s32.totalorder %s284_s30, %s284_s30 }
 0x13e   :  { %p564_p4 = scmp.ne.s32.totalorder %s284_s30, %s563_s7  ;;  %p569_p6 = scmp.lt.s32.totalorder %s563_s7, %s563_s7 }
 0x140   :  { %p570_p7 = por %p569_p6, %p568_p5 }
 0x142   :  { %p571_p8 = pnand %p570_p7, %p564_p4 }
 0x1bf   :  { %v168_v57 = vpop.xlane.xlu0 %167 }
 0x1c0   :  { %v170_v58 = vadd.f32 %v169_v56, %v168_v57 }
 0x1c2   :  { %172 = vst.msk [vmem:[#allocation3] sm:$0xff] %vm69_vm0, %v170_v58 }
 0x1c9   :  { %v275_v59 = vld [vmem:[#allocation3] sm:$0xff] }
 0x1ca   :  { %276 = vst.msk [vmem:[%s743_s6] sm:$0xff] %vm69_vm0, %v275_v59 }
 0x205   :  { %v256_v61 = vpop.f32.mrb[0].mxu1 }
 0x206   :  { %v273_v62 = vadd.f32 %v312_v60, %v256_v61  ;;  %v416_v63 = vpop.f32.mrb[1].mxu1 }
 0x208   :  { %274 = vst [vmem:[#allocation10] sm:$0xff] %v273_v62 }
 0x209   :  { %574 = shalt.err (!%p571_p8)
}
 0x20a   :  { %s575_s9 = scalar_lea.hbm %s742_s5, 128 }
 0x20b   :  { %p576_p9 = scmp.ne.s32.totalorder %s742_s5, %s575_s9  ;;  %p579_p10 = scmp.lt.u32.totalorder %s575_s9, %s742_s5 }
 0x20d   :  { %p581_p11 = pnand %p579_p10, %p576_p9 }
 0x20f   :  { %584 = shalt.err (!%p581_p11)
}
 0x210   :  { %286 = dma.vmem_to_hbm [thread:$0]  %s284_s30, 128, %s742_s5, [#allocation6]  }
 0x211   :  { %589 = dma.done.wait [#allocation6], 128  }
 0x212   :  { %590 = vsyncadd [#allocation6], 4294967168 }
 0x213   :  { %591 = dma.done.wait [#allocation12], 128  }
 0x214   :  { %592 = vsyncadd [#allocation12], 4294967168 }
 0x215   :  { %307 = vsyncpa [#allocation5], 1 }
 0x216   :  { %308 = vsyncpa [#allocation8], 1 }
 0x217   :  { %309 = vsyncpa [#allocation6], 1 }
 0x218   :  { %310 = vsyncpa [#allocation12], 1 }

</bundles_post_ra>
